<compile_context>
chip_gen: v7x
topology: tpu7x:2x2x1
jax: 0.10.0
libtpu: 0.0.40
codegen_flags: <defaults>
</compile_context>

<pallas_src>
import functools
import math

import jax
import jax.numpy as jnp
from jax.experimental import pallas as pl
from jax.experimental.pallas import tpu as pltpu


def _round_up(x, m):
    return (x + m - 1) // m * m


def _transformer_kernel(q_ref, a_ref, qw_ref, kvw_ref, hsum_ref, out_ref, *, Lk):
    # q_ref   : (TB, col)          bf16   batch tile of queries (Lq squeezed)
    # a_ref   : (TB*Lk, ais)       bf16   batch tile of the flattened action list
    # qw_ref  : (col,  2*nhd)      bf16   Q weight zero-padded on the V half
    # kvw_ref : (ais,  2*nhd)      bf16   concat([K, V], axis=1)
    # hsum_ref: (2*nhd, 2*nhd)     bf16   block-diag head-sum (1/8 scale folded in)
    # out_ref : (TB, 2*nhd)        f32    V half holds the attention result
    TB = q_ref.shape[0]
    nhd2 = out_ref.shape[-1]

    # Fused projections — bf16 MXU matmuls with f32 accumulation.
    q_proj = jnp.dot(q_ref[...], qw_ref[...],
                     preferred_element_type=jnp.float32)          # (TB, 2nhd)
    kv_flat = jnp.dot(a_ref[...], kvw_ref[...],
                      preferred_element_type=jnp.float32)         # (TB*Lk, 2nhd)
    kv3 = kv_flat.reshape(TB, Lk, nhd2)                           # (TB, Lk, 2nhd)

    # Per-head q·k scores without transposes or per-head slicing:
    # elementwise q*k (q is zero on the V half), then the block-diagonal
    # head-sum matmul broadcasts each head's score across all of its lanes
    # (both the K and V halves).  NOTE: the torch module hard-codes the
    # attention scale as /8.0 (NOT 1/sqrt(att_emb_size)); the 0.125 is folded
    # into hsum on the host — do not "fix" it.
    prod = (q_proj.reshape(TB, 1, nhd2) * kv3).astype(jnp.bfloat16)
    scores = jnp.dot(prod.reshape(TB * Lk, nhd2), hsum_ref[...],
                     preferred_element_type=jnp.float32).reshape(TB, Lk, nhd2)

    # Numerically stable softmax over the key axis (sublane axis).
    m = jnp.max(scores, axis=1, keepdims=True)                    # (TB, 1, 2nhd)
    e = jnp.exp(scores - m)                                       # (TB, Lk, 2nhd)
    denom = jnp.sum(e, axis=1, keepdims=True)                     # (TB, 1, 2nhd)
    probs = e * (1.0 / denom)                                     # exact reciprocal

    # Weighted sum of values; the per-head probability broadcast is already
    # baked into probs, so this is a plain multiply + sublane sum.  The K half
    # of the result is unused and discarded in the wrapper; the store itself is
    # lane-dense (2*nhd = 128 lanes for the default config).
    out_ref[...] = jnp.sum(probs * kv3, axis=1)                   # (TB, 2nhd)


def transformer_forward(query_input, action_list_input, Q, K, V, *,
                        nh, att_emb_size, block_b=512):
    B, Lq, col = query_input.shape
    assert Lq == 1, "torch reshape to (B, nh*att_emb_size) implies Lq == 1"
    _, Lk, ais = action_list_input.shape
    d = att_emb_size
    nhd = nh * d
    nhd2 = 2 * nhd
    assert Q.shape == (col, nhd)
    assert K.shape == (ais, nhd) and V.shape == (ais, nhd)

    # --- tile selection: minimal padding, >=2 grid steps when the batch allows
    # it (so both v7x TensorCores get work; harmless on single-core v5e/v6e).
    n_tiles = pl.cdiv(B, block_b)
    if B >= 16 and n_tiles < 2:
        n_tiles = 2
    TB = _round_up(pl.cdiv(B, n_tiles), 8)
    B_pad = _round_up(B, TB)
    n_tiles = B_pad // TB

    # --- bf16 inputs for the MXU (accumulation stays f32 in-kernel).
    q2 = query_input.reshape(B, col).astype(jnp.bfloat16)
    a2 = action_list_input.reshape(B * Lk, ais).astype(jnp.bfloat16)
    if B_pad != B:
        q2 = jnp.pad(q2, ((0, B_pad - B), (0, 0)))
        a2 = jnp.pad(a2, ((0, (B_pad - B) * Lk), (0, 0)))

    # Q zero-padded to 2*nhd lanes; K and V fused into one lane-dense weight.
    q_w = jnp.concatenate([Q, jnp.zeros((col, nhd), Q.dtype)], axis=1).astype(jnp.bfloat16)
    kv_w = jnp.concatenate([K, V], axis=1).astype(jnp.bfloat16)

    # Block-diagonal head-sum matrix (built once on the host, constant input):
    # hsum[i, j] = 1/8 if i is a key lane and head(i) == head(j mod nhd).
    # 0.125 is exact in bf16.
    i_idx = jnp.arange(nhd2)[:, None]
    j_idx = jnp.arange(nhd2)[None, :]
    hsum = jnp.where((i_idx < nhd) & ((i_idx // d) == ((j_idx % nhd) // d)),
                     0.125, 0.0).astype(jnp.bfloat16)

    kernel = functools.partial(_transformer_kernel, Lk=Lk)

    out = pl.pallas_call(
        kernel,
        out_shape=jax.ShapeDtypeStruct((B_pad, nhd2), jnp.float32),
        grid_spec=pltpu.PrefetchScalarGridSpec(
            num_scalar_prefetch=0,
            grid=(n_tiles,),
            in_specs=[
                pl.BlockSpec((TB, col), lambda i: (i, 0)),
                pl.BlockSpec((TB * Lk, ais), lambda i: (i, 0)),
                pl.BlockSpec((col, nhd2), lambda i: (0, 0)),
                pl.BlockSpec((ais, nhd2), lambda i: (0, 0)),
                pl.BlockSpec((nhd2, nhd2), lambda i: (0, 0)),
            ],
            out_specs=pl.BlockSpec((TB, nhd2), lambda i: (i, 0)),
        ),
        compiler_params=pltpu.CompilerParams(
            dimension_semantics=("parallel",),
            vmem_limit_bytes=64 * 1024 * 1024,
        ),
    )(q2, a2, q_w, kv_w, hsum)

    # V half of the lane-dense slab is the attention result.
    return out[:B, nhd:]


def _xavier_uniform(key, shape, dtype=jnp.float32):
    fan_in, fan_out = shape
    bound = math.sqrt(6.0 / (fan_in + fan_out))
    return jax.random.uniform(key, shape, dtype, minval=-bound, maxval=bound)


def _reference(query_input, action_list_input, Q, K, V, nh, d):
    # Pure-JAX f32 reference mirroring the torch semantics exactly.
    hp = jax.lax.Precision.HIGHEST
    querys = jnp.tensordot(query_input, Q, axes=([-1], [0]), precision=hp)
    keys = jnp.tensordot(action_list_input, K, axes=([-1], [0]), precision=hp)
    values = jnp.tensordot(action_list_input, V, axes=([-1], [0]), precision=hp)
    split = lambda x: jnp.stack(jnp.split(x, nh, axis=2), axis=0)     # (nh,B,L,d)
    q, k, v = split(querys), split(keys), split(values)
    scores = jnp.matmul(q, jnp.swapaxes(k, -2, -1), precision=hp) / 8.0
    probs = jax.nn.softmax(scores, axis=-1)
    res = jnp.matmul(probs, v, precision=hp)                          # (nh,B,1,d)
    res = jnp.transpose(res, (1, 2, 0, 3))                            # (B,1,nh,d)
    return res.reshape(query_input.shape[0], nh * d)


if __name__ == "__main__":
    # Small, deterministic example consistent with the module's __init__.
    B, Lq, Lk = 10, 1, 8          # B=10 also exercises the pad/slice path
    col = 32
    nh = 4
    action_item_size = 64
    att_emb_size = 16

    root = jax.random.PRNGKey(0)
    k_q, k_a, k_Q, k_K, k_V = jax.random.split(root, 5)

    query_input = jax.random.normal(k_q, (B, Lq, col), jnp.float32)
    action_list_input = jax.random.normal(k_a, (B, Lk, action_item_size), jnp.float32)

    Q = _xavier_uniform(k_Q, (col, att_emb_size * nh))
    K = _xavier_uniform(k_K, (action_item_size, att_emb_size * nh))
    V = _xavier_uniform(k_V, (action_item_size, att_emb_size * nh))

    out = transformer_forward(
        query_input, action_list_input, Q, K, V, nh=nh, att_emb_size=att_emb_size
    )
    out = jax.block_until_ready(out)

    ref = _reference(query_input, action_list_input, Q, K, V, nh, att_emb_size)
    assert out.shape == (B, nh * att_emb_size)
    # bf16 MXU projections => ~1e-2-level agreement with the f32 reference.
    assert jnp.allclose(out, ref, atol=3e-2, rtol=3e-2), "mismatch vs reference"

    print("KERNEL_OK")
</pallas_src>

<mosaic_0001>
module attributes {stable_mosaic.version = 11 : i64} {
  func.func @_transformer_kernel(%arg0: i32, %arg1: memref<16x32xbf16, #tpu.memory_space<vmem>>, %arg2: memref<128x64xbf16, #tpu.memory_space<vmem>>, %arg3: memref<32x128xbf16, #tpu.memory_space<vmem>>, %arg4: memref<64x128xbf16, #tpu.memory_space<vmem>>, %arg5: memref<128x128xbf16, #tpu.memory_space<vmem>>, %arg6: memref<16x128xf32, #tpu.memory_space<vmem>>) attributes {dimension_semantics = [#tpu.dimension_semantics<parallel>], iteration_bounds = array<i64: 1>, scalar_prefetch = 0 : i64, scratch_operands = 0 : i64, tpu.core_type = #tpu.core_type<tc>, window_params = [{transform_indices = @transform_0, window_bounds = array<i64: 16, 32>}, {transform_indices = @transform_1, window_bounds = array<i64: 128, 64>}, {pipeline_mode = #tpu.pipeline_mode<synchronous>, transform_indices = @transform_2, window_bounds = array<i64: 32, 128>}, {pipeline_mode = #tpu.pipeline_mode<synchronous>, transform_indices = @transform_3, window_bounds = array<i64: 64, 128>}, {pipeline_mode = #tpu.pipeline_mode<synchronous>, transform_indices = @transform_4, window_bounds = array<i64: 128, 128>}, {transform_indices = @transform_5, window_bounds = array<i64: 16, 128>}]} {
    %c0 = arith.constant 0 : index
    %c0_0 = arith.constant 0 : index
    %0 = vector.load %arg1[%c0, %c0_0] : memref<16x32xbf16, #tpu.memory_space<vmem>>, vector<16x32xbf16>
    %c0_1 = arith.constant 0 : index
    %c0_2 = arith.constant 0 : index
    %1 = vector.load %arg3[%c0_1, %c0_2] : memref<32x128xbf16, #tpu.memory_space<vmem>>, vector<32x128xbf16>
    %cst = arith.constant dense<0.000000e+00> : vector<16x128xf32>
    %2 = tpu.matmul %0, %1, %cst {dimension_numbers = #tpu.dot_dimension_numbers<[1], [0], [0], [1], [0, 0, 1, 1], [], []>} : vector<16x32xbf16>, vector<32x128xbf16>, vector<16x128xf32> -> vector<16x128xf32>
    %c0_3 = arith.constant 0 : index
    %c0_4 = arith.constant 0 : index
    %3 = vector.load %arg2[%c0_3, %c0_4] : memref<128x64xbf16, #tpu.memory_space<vmem>>, vector<128x64xbf16>
    %c0_5 = arith.constant 0 : index
    %c0_6 = arith.constant 0 : index
    %4 = vector.load %arg4[%c0_5, %c0_6] : memref<64x128xbf16, #tpu.memory_space<vmem>>, vector<64x128xbf16>
    %cst_7 = arith.constant dense<0.000000e+00> : vector<128x128xf32>
    %5 = tpu.matmul %3, %4, %cst_7 {dimension_numbers = #tpu.dot_dimension_numbers<[1], [0], [0], [1], [0, 0, 1, 1], [], []>} : vector<128x64xbf16>, vector<64x128xbf16>, vector<128x128xf32> -> vector<128x128xf32>
    %6 = vector.shape_cast %5 : vector<128x128xf32> to vector<16x8x128xf32>
    %7 = vector.shape_cast %2 : vector<16x128xf32> to vector<16x1x128xf32>
    %8 = vector.broadcast %7 : vector<16x1x128xf32> to vector<16x8x128xf32>
    %9 = arith.mulf %8, %6 : vector<16x8x128xf32>
    %10 = arith.truncf %9 : vector<16x8x128xf32> to vector<16x8x128xbf16>
    %11 = vector.shape_cast %10 : vector<16x8x128xbf16> to vector<128x128xbf16>
    %c0_8 = arith.constant 0 : index
    %c0_9 = arith.constant 0 : index
    %12 = vector.load %arg5[%c0_8, %c0_9] : memref<128x128xbf16, #tpu.memory_space<vmem>>, vector<128x128xbf16>
    %cst_10 = arith.constant dense<0.000000e+00> : vector<128x128xf32>
    %13 = tpu.matmul %11, %12, %cst_10 {dimension_numbers = #tpu.dot_dimension_numbers<[1], [0], [0], [1], [0, 0, 1, 1], [], []>} : vector<128x128xbf16>, vector<128x128xbf16>, vector<128x128xf32> -> vector<128x128xf32>
    %14 = vector.shape_cast %13 : vector<128x128xf32> to vector<16x8x128xf32>
    %cst_11 = arith.constant dense<0xFF800000> : vector<16x128xf32>
    %15 = vector.multi_reduction <maximumf>, %14, %cst_11 [1] : vector<16x8x128xf32> to vector<16x128xf32>
    %16 = vector.shape_cast %15 : vector<16x128xf32> to vector<16x1x128xf32>
    %17 = vector.broadcast %16 : vector<16x1x128xf32> to vector<16x8x128xf32>
    %18 = arith.subf %14, %17 : vector<16x8x128xf32>
    %19 = math.exp %18 : vector<16x8x128xf32>
    %cst_12 = arith.constant dense<0.000000e+00> : vector<16x128xf32>
    %20 = vector.multi_reduction <add>, %19, %cst_12 [1] : vector<16x8x128xf32> to vector<16x128xf32>
    %21 = vector.shape_cast %20 : vector<16x128xf32> to vector<16x1x128xf32>
    %cst_13 = arith.constant 1.000000e+00 : f32
    %22 = vector.broadcast %cst_13 : f32 to vector<16x1x128xf32>
    %23 = arith.divf %22, %21 : vector<16x1x128xf32>
    %24 = vector.broadcast %23 : vector<16x1x128xf32> to vector<16x8x128xf32>
    %25 = arith.mulf %19, %24 : vector<16x8x128xf32>
    %26 = arith.mulf %25, %6 : vector<16x8x128xf32>
    %cst_14 = arith.constant dense<0.000000e+00> : vector<16x128xf32>
    %27 = vector.multi_reduction <add>, %26, %cst_14 [1] : vector<16x8x128xf32> to vector<16x128xf32>
    %c0_15 = arith.constant 0 : index
    %c0_16 = arith.constant 0 : index
    %28 = vector.load %arg6[%c0_15, %c0_16] : memref<16x128xf32, #tpu.memory_space<vmem>>, vector<16x128xf32>
    tpu.vector_store %arg6[%c0_15, %c0_16], %27 {strides = array<i32>} : memref<16x128xf32, #tpu.memory_space<vmem>>, vector<16x128xf32>,
    return
  }
  func.func @transform_0(%arg0: i32) -> (i32, i32) {
    %c0_i32 = arith.constant 0 : i32
    %c0_i32_0 = arith.constant 0 : i32
    return %arg0, %c0_i32 : i32, i32
  }
  func.func @transform_1(%arg0: i32) -> (i32, i32) {
    %c0_i32 = arith.constant 0 : i32
    %c0_i32_0 = arith.constant 0 : i32
    return %arg0, %c0_i32 : i32, i32
  }
  func.func @transform_2(%arg0: i32) -> (i32, i32) {
    %c0_i32 = arith.constant 0 : i32
    %c0_i32_0 = arith.constant 0 : i32
    %c0_i32_1 = arith.constant 0 : i32
    return %c0_i32, %c0_i32_0 : i32, i32
  }
  func.func @transform_3(%arg0: i32) -> (i32, i32) {
    %c0_i32 = arith.constant 0 : i32
    %c0_i32_0 = arith.constant 0 : i32
    %c0_i32_1 = arith.constant 0 : i32
    return %c0_i32, %c0_i32_0 : i32, i32
  }
  func.func @transform_4(%arg0: i32) -> (i32, i32) {
    %c0_i32 = arith.constant 0 : i32
    %c0_i32_0 = arith.constant 0 : i32
    %c0_i32_1 = arith.constant 0 : i32
    return %c0_i32, %c0_i32_0 : i32, i32
  }
  func.func @transform_5(%arg0: i32) -> (i32, i32) {
    %c0_i32 = arith.constant 0 : i32
    %c0_i32_0 = arith.constant 0 : i32
    return %arg0, %c0_i32 : i32, i32
  }
}

</mosaic_0001>

<bundles_post_ra>
// kernel: tpu_custom_call.1
= control target key start
LH: loop header
LB: loop body
LE: loop exit
PB: predicated region body
PF: predicated region fallthrough
CT: control target
= control target key end

     0   :  { %10 = vsyncpa [#allocation3], 0  ;;  %s2050_s0 = inlined_call_operand.hbm [shape: bf16[16,32], index: 0, kind: input, shape index: {}]   ;;  %s2051_s1 = inlined_call_operand.hbm [shape: bf16[128,64], index: 1, kind: input, shape index: {}]   ;;  %s2052_s2 = inlined_call_operand.hbm [shape: bf16[32,128], index: 2, kind: input, shape index: {}]   ;;  %s2053_s3 = inlined_call_operand.hbm [shape: bf16[64,128], index: 3, kind: input, shape index: {}]   ;;  %s2054_s4 = inlined_call_operand.hbm [shape: bf16[128,128], index: 4, kind: input, shape index: {}]   ;;  %s2055_s5 = inlined_call_operand.hbm [shape: f32[16,128], index: 5, kind: output, shape index: {}]  }
   0x1   :  { %11 = vsyncpa [#allocation6], 0 }
   0x2   :  { %12 = vsyncpa [#allocation9], 0 }
   0x3   :  { %13 = vsyncpa [#allocation4], 0  ;;  %s1632_s18 = smov [#allocation5]   ;;  %s1633_s20 = smov [#allocation8]  }
   0x4   :  { %s31_s19 = sshll.u32 %s1632_s18, 4  ;;  %s55_s21 = sshll.u32 %s1633_s20, 4  ;;  %s32_s19 = int_to_ptr.vmem [resolvable:$true] %s31_s19  ;;  %s1675_s21 = int_to_ptr.vmem [resolvable:$true] %s55_s21 }
   0x5   :  { %s1492_s24 = scalar_lea.hbm %s2051_s1, 1024 }
   0x6   :  { %p1493_p0 = scmp.ne.s32.totalorder %s2051_s1, %s1492_s24  ;;  %p1496_p1 = scmp.lt.u32.totalorder %s1492_s24, %s2051_s1 }
   0x8   :  { %p1498_p2 = pnand %p1496_p1, %p1493_p0 }
   0xa   :  { %1501 = shalt.err (!%p1498_p2)
}
   0xb   :  { %s1502_s29 = scalar_lea.vmem %s32_s19, 1024  ;;  %p1507_p4 = scmp.lt.s32.totalorder %s32_s19, %s32_s19 }
   0xc   :  { %p1503_p3 = scmp.ne.s32.totalorder %s32_s19, %s1502_s29  ;;  %p1508_p5 = scmp.lt.s32.totalorder %s1502_s29, %s1502_s29 }
   0xe   :  { %p1509_p6 = por %p1508_p5, %p1507_p4 }
  0x10   :  { %p1510_p7 = pnand %p1509_p6, %p1503_p3 }
  0x12   :  { %1513 = shalt.err (!%p1510_p7)
}
  0x13   :  { %s1634_s30 = smov 64   ;;  %s1635_s6 = smov 4  }
  0x14   :  { %37 = dma.hbm_to_vmem [thread:$0]  %s2051_s1, 1024, %s32_s19, [#allocation6], %s1634_s30, %s1634_s30, %s1635_s6  }
  0x15   :  { %s1514_s11 = scalar_lea.hbm %s2053_s3, 512 }
  0x16   :  { %p1515_p8 = scmp.ne.s32.totalorder %s2053_s3, %s1514_s11  ;;  %p1518_p9 = scmp.lt.u32.totalorder %s1514_s11, %s2053_s3 }
  0x18   :  { %p1520_p10 = pnand %p1518_p9, %p1515_p8 }
  0x1a   :  { %1523 = shalt.err (!%p1520_p10)
}
  0x1b   :  { %s1524_s16 = scalar_lea.vmem %s1675_s21, 512  ;;  %p1529_p12 = scmp.lt.s32.totalorder %s1675_s21, %s1675_s21 }
  0x1c   :  { %p1525_p11 = scmp.ne.s32.totalorder %s1675_s21, %s1524_s16  ;;  %p1530_p13 = scmp.lt.s32.totalorder %s1524_s16, %s1524_s16 }
  0x1e   :  { %p1531_p0 = por %p1530_p13, %p1529_p12 }
  0x20   :  { %p1532_p1 = pnand %p1531_p0, %p1525_p11 }
  0x22   :  { %1535 = shalt.err (!%p1532_p1)
}
  0x23   :  { %61 = dma.hbm_to_vmem [thread:$0]  %s2053_s3, 512, %s1675_s21, [#allocation9], %s1634_s30, %s1634_s30, %s1635_s6  }
  0x24   :  { %s1636_s18 = smov [#allocation2]   ;;  %s1637_s20 = smov [#allocation7]  }
  0x25   :  { %s19_s19 = sshll.u32 %s1636_s18, 4  ;;  %s43_s22 = sshll.u32 %s1637_s20, 4  ;;  %s20_s19 = int_to_ptr.vmem [resolvable:$true] %s19_s19  ;;  %s1712_s22 = int_to_ptr.vmem [resolvable:$true] %s43_s22 }
  0x26   :  { %s1536_s25 = scalar_lea.hbm %s2050_s0, 128 }
  0x27   :  { %p1537_p2 = scmp.ne.s32.totalorder %s2050_s0, %s1536_s25  ;;  %p1540_p3 = scmp.lt.u32.totalorder %s1536_s25, %s2050_s0 }
  0x29   :  { %p1542_p4 = pnand %p1540_p3, %p1537_p2 }
  0x2b   :  { %1545 = shalt.err (!%p1542_p4)
}
  0x2c   :  { %s1546_s3 = scalar_lea.vmem %s20_s19, 128  ;;  %p1551_p6 = scmp.lt.s32.totalorder %s20_s19, %s20_s19 }
  0x2d   :  { %p1547_p5 = scmp.ne.s32.totalorder %s20_s19, %s1546_s3  ;;  %p1552_p7 = scmp.lt.s32.totalorder %s1546_s3, %s1546_s3 }
  0x2f   :  { %p1553_p8 = por %p1552_p7, %p1551_p6 }
  0x31   :  { %p1554_p9 = pnand %p1553_p8, %p1547_p5 }
  0x33   :  { %1557 = shalt.err (!%p1554_p9)
}
  0x34   :  { %25 = dma.hbm_to_vmem [thread:$0]  %s2050_s0, 128, %s20_s19, [#allocation3], %s1634_s30, %s1634_s30, %s1635_s6  }
  0x35   :  { %s1558_s10 = scalar_lea.hbm %s2052_s2, 256 }
  0x36   :  { %p1559_p10 = scmp.ne.s32.totalorder %s2052_s2, %s1558_s10  ;;  %p1562_p11 = scmp.lt.u32.totalorder %s1558_s10, %s2052_s2 }
  0x38   :  { %p1564_p12 = pnand %p1562_p11, %p1559_p10 }
  0x3a   :  { %1567 = shalt.err (!%p1564_p12)
}
  0x3b   :  { %s1568_s15 = scalar_lea.vmem %s1712_s22, 256  ;;  %p1573_p0 = scmp.lt.s32.totalorder %s1712_s22, %s1712_s22 }
  0x3c   :  { %p1569_p13 = scmp.ne.s32.totalorder %s1712_s22, %s1568_s15  ;;  %p1574_p1 = scmp.lt.s32.totalorder %s1568_s15, %s1568_s15 }
  0x3e   :  { %p1575_p2 = por %p1574_p1, %p1573_p0 }
  0x40   :  { %p1576_p3 = pnand %p1575_p2, %p1569_p13 }
  0x42   :  { %1579 = shalt.err (!%p1576_p3)
}
  0x43   :  { %49 = dma.hbm_to_vmem [thread:$0]  %s2052_s2, 256, %s1712_s22, [#allocation6], %s1634_s30, %s1634_s30, %s1635_s6  }
  0x44   :  { %s1638_s1 = smov [#allocation10]   ;;  %s1580_s20 = scalar_lea.hbm %s2054_s4, 1024 }
  0x45   :  { %s67_s17 = sshll.u32 %s1638_s1, 4  ;;  %p1581_p4 = scmp.ne.s32.totalorder %s2054_s4, %s1580_s20  ;;  %s68_s17 = int_to_ptr.vmem [resolvable:$true] %s67_s17 }
  0x46   :  { %p1584_p5 = scmp.lt.u32.totalorder %s1580_s20, %s2054_s4 }
  0x48   :  { %p1586_p6 = pnand %p1584_p5, %p1581_p4 }
  0x4a   :  { %1589 = shalt.err (!%p1586_p6)
}
  0x4b   :  { %s1590_s27 = scalar_lea.vmem %s68_s17, 1024  ;;  %p1595_p8 = scmp.lt.s32.totalorder %s68_s17, %s68_s17 }
  0x4c   :  { %p1591_p7 = scmp.ne.s32.totalorder %s68_s17, %s1590_s27  ;;  %p1596_p9 = scmp.lt.s32.totalorder %s1590_s27, %s1590_s27 }
  0x4e   :  { %p1597_p10 = por %p1596_p9, %p1595_p8 }
  0x50   :  { %p1598_p11 = pnand %p1597_p10, %p1591_p7 }
  0x52   :  { %1601 = shalt.err (!%p1598_p11)
}
  0x53   :  { %73 = dma.hbm_to_vmem [thread:$0]  %s2054_s4, 1024, %s68_s17, [#allocation9], %s1634_s30, %s1634_s30, %s1635_s6  }
  0x54   :  { %1624 = dma.done.wait [#allocation3], 128  }
  0x55   :  { %1625 = vsyncadd [#allocation3], 4294967168 }
  0x56   :  { %1626 = dma.done.wait [#allocation6], 1280  }
  0x57   :  { %1627 = vsyncadd [#allocation6], 4294966016 }
  0x58   :  { %1628 = dma.done.wait [#allocation9], 1536  }
  0x59   :  { %1629 = vsyncadd [#allocation9], 4294965760  ;;  %v1639_v0 = vmov 0.0   ;;  %vm1640_vm0 = vmmov 0   ;;  %v1405_v1 = vld [vmem:[#allocation7] sm:$0xff]   ;;  %v1406_v2 = vld [vmem:[#allocation7 + $0x8] sm:$0xff]   ;;  %v374_v26 = vlaneseq }
  0x5a   :  { %1328 = vmatprep.subr.bf16.mxu1 %v1639_v0  ;;  %1332 = vmatprep.mubr.msk.bf16.mxu1 %vm1640_vm0, %v1639_v0  ;;  %v1408_v3 = vld [vmem:[#allocation8] sm:$0xff]   ;;  %v1407_v4 = vld [vmem:[#allocation2] sm:$0xff]   ;;  %vm113_vm1 = vcmask 261120   ;;  %v1412_v6 = vld [vmem:[#allocation5] sm:$0xff]   ;;  %vm246_vm2 = vcmask 523264   ;;  %vm1205_vm3 = vcmask 1041409  }
  0x5b   :  { %1329 = vmatpush3.bf16.msra.mxu1 %v1405_v1  ;;  %v1409_v5 = vld [vmem:[#allocation8 + $0x8] sm:$0xff]   ;;  %v1410_v7 = vld [vmem:[#allocation8 + $0x10] sm:$0xff]   ;;  %v1411_v8 = vld [vmem:[#allocation8 + $0x18] sm:$0xff]   ;;  %v1641_v24 = vmov 1966171168   ;;  %v375_v28 = vshrl.u32 %v374_v26, 7 }
  0x5c   :  { %1330 = vmatprep.subr.bf16.mxu1 %v1639_v0  ;;  %v1420_v9 = vld [vmem:[#allocation10] sm:$0xff]   ;;  %v1421_v10 = vld [vmem:[#allocation10 + $0x8] sm:$0xff]   ;;  %v1413_v11 = vld [vmem:[#allocation5 + $0x8] sm:$0xff]   ;;  %v372_v25 = vunpack.c.l.s4 %v1641_v24  ;;  %vm1207_vm4 = vcmask 1042434   ;;  %vm1209_vm5 = vcmask 1043459   ;;  %vm1211_vm6 = vcmask 1044484  }
  0x5d   :  { %1360 = vmatprep.subr.bf16.mxu0 %v1420_v9  ;;  %v1414_v12 = vld [vmem:[#allocation5 + $0x10] sm:$0xff]   ;;  %v1415_v13 = vld [vmem:[#allocation5 + $0x18] sm:$0xff]   ;;  %v1416_v14 = vld [vmem:[#allocation5 + $0x20] sm:$0xff]   ;;  %v1778_v41 = vsub.s32 0, %v375_v28  ;;  %vm1213_vm7 = vcmask 1045509   ;;  %vm1215_vm8 = vcmask 1046534  }
  0x5e   :  { %1361 = vmatpush3.bf16.msra.mxu0 %v1420_v9  ;;  %v1417_v15 = vld [vmem:[#allocation5 + $0x28] sm:$0xff]   ;;  %v1418_v16 = vld [vmem:[#allocation5 + $0x30] sm:$0xff]   ;;  %v1419_v17 = vld [vmem:[#allocation5 + $0x38] sm:$0xff]   ;;  %v373_v27 = vunpack.c.0.s8 %v372_v25  ;;  %vm1217_vm9 = vcmask 1047559   ;;  %s1642_s4 = smov [#allocation11]  }
  0x5f   :  { %1331 = vmatpush3.bf16.msra.mxu1 %v1406_v2  ;;  %1362 = vmatprep.subr.bf16.mxu0 %v1421_v10  ;;  %v1422_v18 = vld [vmem:[#allocation10 + $0x10] sm:$0xff]   ;;  %v1423_v19 = vld [vmem:[#allocation10 + $0x18] sm:$0xff]   ;;  %v1424_v20 = vld [vmem:[#allocation10 + $0x20] sm:$0xff]   ;;  %s1235_s30 = sshll.u32 %s1642_s4, 4  ;;  %s1236_s30 = int_to_ptr.vmem [resolvable:$true] %s1235_s30 }
  0x60   :  { %1336 = vmatprep.subr.bf16.mxu1 %v1408_v3  ;;  %v1425_v21 = vld [vmem:[#allocation10 + $0x28] sm:$0xff]   ;;  %v1426_v22 = vld [vmem:[#allocation10 + $0x30] sm:$0xff]   ;;  %v1427_v23 = vld [vmem:[#allocation10 + $0x38] sm:$0xff]   ;;  %v1772_v29 = vsub.s32 %v373_v27, %v375_v28  ;;  %s1602_s6 = scalar_lea.vmem %s1236_s30, 256  ;;  %p1607_p13 = scmp.lt.s32.totalorder %s1236_s30, %s1236_s30 }
  0x61   :  { %p1603_p12 = scmp.ne.s32.totalorder %s1236_s30, %s1602_s6  ;;  %p1608_p0 = scmp.lt.s32.totalorder %s1602_s6, %s1602_s6 }
  0x62   :  { %1333 = vmatmul.mubr.msk.bf16.vlgmr.msra.gmra.mrb[0].mxu1 %vm113_vm1, %v1407_v4  ;;  %1363 = vmatpush3.bf16.msra.mxu0 %v1421_v10 }
  0x63   :  { %1337 = vmatpush3.bf16.msra.mxu1 %v1408_v3  ;;  %1344 = vmatprep.mubr.msk.bf16.mxu1 %vm246_vm2, %v1412_v6  ;;  %p1609_p1 = por %p1608_p0, %p1607_p13 }
  0x64   :  { %1338 = vmatprep.subr.bf16.mxu1 %v1409_v5  ;;  %1364 = vmatprep.subr.bf16.mxu0 %v1422_v18 }
  0x65   :  { %p1610_p2 = pnand %p1609_p1, %p1603_p12 }
  0x66   :  { %1365 = vmatpush3.bf16.msra.mxu0 %v1422_v18 }
  0x67   :  { %1339 = vmatpush3.bf16.msra.mxu1 %v1409_v5  ;;  %1366 = vmatprep.subr.bf16.mxu0 %v1423_v19 }
  0x68   :  { %1340 = vmatprep.subr.bf16.mxu1 %v1410_v7 }
  0x6a   :  { %1367 = vmatpush3.bf16.msra.mxu0 %v1423_v19 }
  0x6b   :  { %1341 = vmatpush3.bf16.msra.mxu1 %v1410_v7  ;;  %1368 = vmatprep.subr.bf16.mxu0 %v1424_v20 }
  0x6c   :  { %1342 = vmatprep.subr.bf16.mxu1 %v1411_v8 }
  0x6e   :  { %1369 = vmatpush3.bf16.msra.mxu0 %v1424_v20 }
  0x6f   :  { %1343 = vmatpush3.bf16.msra.mxu1 %v1411_v8  ;;  %1370 = vmatprep.subr.bf16.mxu0 %v1425_v21 }
  0x72   :  { %1345 = vmatmul.mubr.msk.bf16.vlgmr.msra.gmra.mrb[4].mxu1 %vm246_vm2, %v1413_v11  ;;  %1371 = vmatpush3.bf16.msra.mxu0 %v1425_v21 }
  0x73   :  { %1348 = vmatprep.mubr.msk.bf16.mxu1 %vm246_vm2, %v1414_v12  ;;  %1372 = vmatprep.subr.bf16.mxu0 %v1426_v22 }
  0x76   :  { %1373 = vmatpush3.bf16.msra.mxu0 %v1426_v22 }
  0x77   :  { %1374 = vmatprep.subr.bf16.mxu0 %v1427_v23 }
  0x7a   :  { %1349 = vmatmul.mubr.msk.bf16.gmra.mrb[8].mxu1 %vm246_vm2, %v1415_v13  ;;  %1375 = vmatpush3.bf16.msra.mxu0 %v1427_v23 }
  0x7b   :  { %1352 = vmatprep.mubr.msk.bf16.mxu1 %vm246_vm2, %v1416_v14 }
  0x82   :  { %1353 = vmatmul.mubr.msk.bf16.gmra.mrb[12].mxu1 %vm246_vm2, %v1417_v15 }
  0x83   :  { %1356 = vmatprep.mubr.msk.bf16.mxu1 %vm246_vm2, %v1418_v16 }
  0x8a   :  { %1357 = vmatmul.mubr.msk.bf16.gmra.mrb[16].mxu1 %vm246_vm2, %v1419_v17 }
 0x135   :  { %v151_v30 = vpop.f32.mrb[0].mxu1 }
 0x136   :  { %v377_v31 = vrot.slane %v151_v30, %v1772_v29  ;;  %v1334_v32 = vpop.f32.mrb[1].mxu1  ;;  %v370_v35 = vcombine.high %v151_v30, %v151_v30 }
 0x137   :  { %v154_v33 = vpop.f32.mrb[2].mxu1 }
 0x138   :  { %v1335_v34 = vpop.f32.mrb[3].mxu1  ;;  %v385_v36 = vcombine.high %v377_v31, %v377_v31  ;;  %v393_v37 = vrot.slane %v377_v31, %v1772_v29  ;;  %v384_v38 = vrot.slane %v370_v35, %v1772_v29  ;;  %v426_v48 = vrot.slane %v154_v33, %v1772_v29 }
 0x139   :  { %v419_v60 = vcombine.high %v154_v33, %v154_v33 }
 0x13a   :  { %v407_v39 = vrot.slane %v385_v36, %v1772_v29  ;;  %v415_v40 = vcombine.high %v393_v37, %v393_v37  ;;  %v386_v42 = vcombine.high %v384_v38, %v384_v38  ;;  %v400_v44 = vrot.slane %v384_v38, %v1772_v29 }
 0x13b   :  { %v471_v47 = vrot.slane %v393_v37, %v1778_v41  ;;  %v434_v61 = vcombine.high %v426_v48, %v426_v48  ;;  %v442_v1 = vrot.slane %v426_v48, %v1772_v29  ;;  %v433_v5 = vrot.slane %v419_v60, %v1772_v29 }
 0x13c   :  { %v417_v43 = vcombine.high %v407_v39, %v407_v39  ;;  %v479_v45 = vrot.slane %v415_v40, %v1778_v41  ;;  %v414_v52 = vrot.slane %v386_v42, %v1772_v29  ;;  %v475_v55 = vrot.slane %v407_v39, %v1778_v41 }
 0x13d   :  { %v416_v58 = vcombine.high %v400_v44, %v400_v44  ;;  %v487_v4 = vrot.slane %v400_v44, %v1778_v41  ;;  %v456_v6 = vrot.slane %v434_v61, %v1772_v29  ;;  %v464_v15 = vcombine.high %v442_v1, %v442_v1 }
 0x13e   :  { %v483_v51 = vrot.slane %v417_v43, %v1778_v41  ;;  %v418_v63 = vcombine.high %v414_v52, %v414_v52  ;;  %v491_v12 = vrot.slane %v414_v52, %v1778_v41  ;;  %v435_v17 = vcombine.high %v433_v5, %v433_v5 }
 0x13f   :  { %v495_v2 = vrot.slane %v416_v58, %v1778_v41  ;;  %v466_v19 = vcombine.high %v456_v6, %v456_v6  ;;  %v449_v21 = vrot.slane %v433_v5, %v1772_v29  ;;  %v511_v22 = vrot.slane %v464_v15, %v1778_v41 }
 0x140   :  { %v499_v9 = vrot.slane %v418_v63, %v1778_v41  ;;  %v503_v24 = vrot.slane %v442_v1, %v1778_v41  ;;  %v463_v28 = vrot.slane %v435_v17, %v1772_v29  ;;  %v507_v32 = vrot.slane %v456_v6, %v1778_v41 }
 0x141   :  { %v515_v27 = vrot.slane %v466_v19, %v1778_v41  ;;  %v465_v35 = vcombine.high %v449_v21, %v449_v21  ;;  %v519_v29 = vrot.slane %v449_v21, %v1778_v41 }
 0x142   :  { %v467_v38 = vcombine.high %v463_v28, %v463_v28 }
 0x143   :  { %v527_v40 = vrot.slane %v465_v35, %v1778_v41 }
 0x145   :  { %v1782_v46 = vpop.f32.mrb[4].mxu1 }
 0x146   :  { %v550_v49 = vmul.f32 %v1782_v46, %v479_v45  ;;  %v1787_v50 = vpop.f32.mrb[5].mxu1  ;;  %v531_v45 = vrot.slane %v467_v38, %v1778_v41 }
 0x147   :  { %v548_v53 = vmul.f32 %v471_v47, %v1787_v50  ;;  %v1792_v54 = vpop.f32.mrb[6].mxu1 }
 0x148   :  { %v551_v56 = vmul.f32 %v1792_v54, %v483_v51  ;;  %v1796_v57 = vpop.f32.mrb[7].mxu1 }
 0x149   :  { %v549_v59 = vmul.f32 %v475_v55, %v1796_v57 }
 0x14a   :  { %v1290_v62 = vpack.c.bf16 %v551_v56, %v550_v49  ;;  %v523_v49 = vrot.slane %v463_v28, %v1778_v41 }
 0x14b   :  { %v1289_v0 = vpack.c.bf16 %v549_v59, %v548_v53 }
 0x14d   :  { %v1801_v3 = vpop.f32.mrb[8].mxu1  ;;  %1376 = vmatprep.mubr.bf16.mxu0 %v1289_v0 }
 0x14e   :  { %v554_v7 = vmul.f32 %v1801_v3, %v495_v2  ;;  %v1807_v8 = vpop.f32.mrb[9].mxu1  ;;  %1377 = vmatmul.mubr.bf16.vlgmr.msra.gmra.mrb[0].mxu0 %v1290_v62 }
 0x14f   :  { %v552_v10 = vmul.f32 %v487_v4, %v1807_v8  ;;  %v1811_v11 = vpop.f32.mrb[10].mxu1 }
 0x150   :  { %v555_v13 = vmul.f32 %v1811_v11, %v499_v9  ;;  %v1815_v14 = vpop.f32.mrb[11].mxu1 }
 0x151   :  { %v553_v16 = vmul.f32 %v491_v12, %v1815_v14 }
 0x152   :  { %v1292_v18 = vpack.c.bf16 %v555_v13, %v554_v7 }
 0x153   :  { %v1291_v20 = vpack.c.bf16 %v553_v16, %v552_v10 }
 0x155   :  { %v1820_v23 = vpop.f32.mrb[12].mxu1  ;;  %1380 = vmatprep.mubr.bf16.mxu0 %v1291_v20 }
 0x156   :  { %v558_v25 = vmul.f32 %v1820_v23, %v511_v22  ;;  %v1824_v26 = vpop.f32.mrb[13].mxu1  ;;  %1381 = vmatmul.mubr.bf16.gmra.mrb[4].mxu0 %v1292_v18 }
 0x157   :  { %v556_v30 = vmul.f32 %v503_v24, %v1824_v26  ;;  %v1829_v31 = vpop.f32.mrb[14].mxu1 }
 0x158   :  { %v559_v33 = vmul.f32 %v1829_v31, %v515_v27  ;;  %v1833_v34 = vpop.f32.mrb[15].mxu1 }
 0x159   :  { %v557_v36 = vmul.f32 %v507_v32, %v1833_v34 }
 0x15a   :  { %v1294_v37 = vpack.c.bf16 %v559_v33, %v558_v25 }
 0x15b   :  { %v1293_v39 = vpack.c.bf16 %v557_v36, %v556_v30 }
 0x15d   :  { %v1837_v42 = vpop.f32.mrb[16].mxu1  ;;  %1384 = vmatprep.mubr.bf16.mxu0 %v1293_v39 }
 0x15e   :  { %v562_v43 = vmul.f32 %v1837_v42, %v527_v40  ;;  %v1841_v44 = vpop.f32.mrb[17].mxu1  ;;  %1385 = vmatmul.mubr.bf16.gmra.mrb[8].mxu0 %v1294_v37 }
 0x15f   :  { %v560_v47 = vmul.f32 %v519_v29, %v1841_v44  ;;  %v1845_v48 = vpop.f32.mrb[18].mxu1 }
 0x160   :  { %v563_v51 = vmul.f32 %v1845_v48, %v531_v45  ;;  %v1849_v52 = vpop.f32.mrb[19].mxu1 }
 0x161   :  { %v561_v53 = vmul.f32 %v523_v49, %v1849_v52 }
 0x162   :  { %v1296_v55 = vpack.c.bf16 %v563_v51, %v562_v43 }
 0x163   :  { %v1295_v56 = vpack.c.bf16 %v561_v53, %v560_v47 }
 0x165   :  { %1388 = vmatprep.mubr.bf16.mxu0 %v1295_v56 }
 0x166   :  { %1389 = vmatmul.mubr.bf16.gmra.mrb[12].mxu0 %v1296_v55 }
 0x221   :  { %v1378_v58 = vpop.f32.mrb[0].mxu0 }
 0x222   :  { %v801_v59 = vrot.slane %v1378_v58, 4  ;;  %v726_v60 = vpop.f32.mrb[1].mxu0 }
 0x223   :  { %v789_v61 = vrot.slane %v726_v60, 4  ;;  %v1379_v62 = vpop.f32.mrb[2].mxu0 }
 0x224   :  { %v802_v63 = vmax.f32 %v1378_v58, %v801_v59  ;;  %v807_v0 = vrot.slane %v1379_v62, 4  ;;  %v729_v1 = vpop.f32.mrb[3].mxu0 }
 0x225   :  { %v790_v2 = vmax.f32 %v726_v60, %v789_v61  ;;  %v795_v41 = vrot.slane %v729_v1, 4 }
 0x226   :  { %v803_v4 = vrot.slane %v802_v63, 2  ;;  %v808_v5 = vmax.f32 %v1379_v62, %v807_v0 }
 0x227   :  { %v791_v6 = vrot.slane %v790_v2, 2  ;;  %v796_v7 = vmax.f32 %v729_v1, %v795_v41 }
 0x228   :  { %v804_v9 = vmax.f32 %v802_v63, %v803_v4  ;;  %v809_v10 = vrot.slane %v808_v5, 2 }
 0x229   :  { %v792_v12 = vmax.f32 %v790_v2, %v791_v6  ;;  %v797_v13 = vrot.slane %v796_v7, 2  ;;  %v1382_v15 = vpop.f32.mrb[4].mxu0 }
 0x22a   :  { %v805_v16 = vrot.slane %v804_v9, 1  ;;  %v810_v17 = vmax.f32 %v808_v5, %v809_v10  ;;  %v825_v18 = vrot.slane %v1382_v15, 4  ;;  %v742_v19 = vpop.f32.mrb[5].mxu0 }
 0x22b   :  { %v793_v20 = vrot.slane %v792_v12, 1  ;;  %v798_v21 = vmax.f32 %v796_v7, %v797_v13  ;;  %v813_v22 = vrot.slane %v742_v19, 4  ;;  %v1852_v24 = vpop.f32.mrb[6].mxu0 }
 0x22c   :  { %v806_v25 = vmax.f32 %v804_v9, %v805_v16  ;;  %v811_v27 = vrot.slane %v810_v17, 1  ;;  %v826_v28 = vmax.f32 %v1382_v15, %v825_v18  ;;  %v831_v30 = vrot.slane %v1852_v24, 4  ;;  %v1855_v32 = vpop.f32.mrb[7].mxu0 }
 0x22d   :  { %v794_v33 = vmax.f32 %v792_v12, %v793_v20  ;;  %v799_v35 = vrot.slane %v798_v21, 1  ;;  %v814_v36 = vmax.f32 %v742_v19, %v813_v22  ;;  %v819_v37 = vrot.slane %v1855_v32, 4 }
 0x22e   :  { %v887_v38 = vsub.f32 %v1378_v58, %v806_v25  ;;  %v812_v39 = vmax.f32 %v810_v17, %v811_v27  ;;  %v827_v40 = vrot.slane %v826_v28, 2  ;;  %v832_v29 = vmax.f32 %v1852_v24, %v831_v30 }
 0x22f   :  { %v885_v43 = vsub.f32 %v726_v60, %v794_v33  ;;  %v800_v45 = vmax.f32 %v798_v21, %v799_v35  ;;  %v815_v47 = vrot.slane %v814_v36, 2  ;;  %v820_v49 = vmax.f32 %v1855_v32, %v819_v37 }
 0x230   :  { %v905_v51 = vmul.f32 1.442695, %v887_v38  ;;  %v888_v53 = vsub.f32 %v1379_v62, %v812_v39  ;;  %v828_v55 = vmax.f32 %v826_v28, %v827_v40  ;;  %v833_v56 = vrot.slane %v832_v29, 2 }
 0x231   :  { %v901_v59 = vmul.f32 1.442695, %v885_v43  ;;  %v886_v61 = vsub.f32 %v729_v1, %v800_v45  ;;  %v816_v63 = vmax.f32 %v814_v36, %v815_v47  ;;  %v821_v0 = vrot.slane %v820_v49, 2  ;;  %v1860_v2 = vpop.f32.mrb[8].mxu0 }
 0x232   :  { %1428 = vpow2.f32 %v905_v51  ;;  %v907_v58 = vmul.f32 1.442695, %v888_v53  ;;  %v829_v41 = vrot.slane %v828_v55, 1  ;;  %v834_v4 = vmax.f32 %v832_v29, %v833_v56  ;;  %v1862_v5 = vpop.f32.mrb[9].mxu0 }
 0x233   :  { %1430 = vpow2.f32 %v901_v59  ;;  %v903_v60 = vmul.f32 1.442695, %v886_v61  ;;  %v817_v6 = vrot.slane %v816_v63, 1  ;;  %v822_v7 = vmax.f32 %v820_v49, %v821_v0  ;;  %v1864_v9 = vpop.f32.mrb[10].mxu0 }
 0x234   :  { %1432 = vpow2.f32 %v907_v58  ;;  %v830_v62 = vmax.f32 %v828_v55, %v829_v41  ;;  %v835_v10 = vrot.slane %v834_v4, 1  ;;  %v849_v1 = vrot.slane %v1860_v2, 4  ;;  %v1867_v12 = vpop.f32.mrb[11].mxu0 }
 0x235   :  { %1434 = vpow2.f32 %v903_v60  ;;  %v818_v13 = vmax.f32 %v816_v63, %v817_v6  ;;  %v823_v16 = vrot.slane %v822_v7, 1  ;;  %v837_v17 = vrot.slane %v1862_v5, 4 }
 0x236   :  { %v891_v18 = vsub.f32 %v1382_v15, %v830_v62  ;;  %v836_v20 = vmax.f32 %v834_v4, %v835_v10  ;;  %v850_v21 = vmax.f32 %v1860_v2, %v849_v1  ;;  %v855_v22 = vrot.slane %v1864_v9, 4 }
 0x237   :  { %v889_v25 = vsub.f32 %v742_v19, %v818_v13  ;;  %v824_v27 = vmax.f32 %v822_v7, %v823_v16  ;;  %v838_v28 = vmax.f32 %v1862_v5, %v837_v17  ;;  %v843_v30 = vrot.slane %v1867_v12, 4 }
 0x238   :  { %v913_v33 = vmul.f32 1.442695, %v891_v18  ;;  %v892_v35 = vsub.f32 %v1852_v24, %v836_v20  ;;  %v851_v36 = vrot.slane %v850_v21, 2  ;;  %v856_v37 = vmax.f32 %v1864_v9, %v855_v22 }
 0x239   :  { %v909_v38 = vmul.f32 1.442695, %v889_v25  ;;  %v890_v15 = vsub.f32 %v1855_v32, %v824_v27  ;;  %v839_v39 = vrot.slane %v838_v28, 2  ;;  %v844_v40 = vmax.f32 %v1867_v12, %v843_v30  ;;  %v1878_v29 = vpop.f32.mrb[12].mxu0 }
 0x23a   :  { %1436 = vpow2.f32 %v913_v33  ;;  %v915_v19 = vmul.f32 1.442695, %v892_v35  ;;  %v852_v43 = vmax.f32 %v850_v21, %v851_v36  ;;  %v857_v45 = vrot.slane %v856_v37, 2  ;;  %v1880_v47 = vpop.f32.mrb[13].mxu0 }
 0x23b   :  { %1438 = vpow2.f32 %v909_v38  ;;  %v911_v49 = vmul.f32 1.442695, %v890_v15  ;;  %v840_v24 = vmax.f32 %v838_v28, %v839_v39  ;;  %v845_v51 = vrot.slane %v844_v40, 2  ;;  %v1882_v53 = vpop.f32.mrb[14].mxu0 }
 0x23c   :  { %v1884_v55 = vpop.eup %1428  ;;  %1440 = vpow2.f32 %v915_v19  ;;  %v853_v32 = vrot.slane %v852_v43, 1  ;;  %v858_v56 = vmax.f32 %v856_v37, %v857_v45  ;;  %v873_v59 = vrot.slane %v1878_v29, 4  ;;  %v1887_v61 = vpop.f32.mrb[15].mxu0 }
 0x23d   :  { %v1889_v63 = vpop.eup %1430  ;;  %v945_v0 = vrot.slane %v1884_v55, 4  ;;  %1442 = vpow2.f32 %v911_v49  ;;  %v841_v58 = vrot.slane %v840_v24, 1  ;;  %v846_v41 = vmax.f32 %v844_v40, %v845_v51 }
 0x23e   :  { %v1892_v4 = vpop.eup %1432  ;;  %v933_v60 = vrot.slane %v1889_v63, 4  ;;  %v854_v6 = vmax.f32 %v852_v43, %v853_v32  ;;  %v859_v7 = vrot.slane %v858_v56, 1  ;;  %v1896_v62 = vmax.f32 %v1878_v29, %v873_v59 }
 0x23f   :  { %v1898_v10 = vpop.eup %1434  ;;  %v946_v1 = vadd.f32 %v1884_v55, %v945_v0  ;;  %v951_v13 = vrot.slane %v1892_v4, 4  ;;  %v842_v16 = vmax.f32 %v840_v24, %v841_v58  ;;  %v847_v17 = vrot.slane %v846_v41, 1 }
 0x240   :  { %v934_v18 = vadd.f32 %v1889_v63, %v933_v60  ;;  %v939_v20 = vrot.slane %v1898_v10, 4  ;;  %v895_v21 = vsub.f32 %v1860_v2, %v854_v6  ;;  %v860_v22 = vmax.f32 %v858_v56, %v859_v7 }
 0x241   :  { %v947_v25 = vrot.slane %v946_v1, 2  ;;  %v952_v27 = vadd.f32 %v1892_v4, %v951_v13  ;;  %v893_v28 = vsub.f32 %v1862_v5, %v842_v16  ;;  %v848_v30 = vmax.f32 %v846_v41, %v847_v17 }
 0x242   :  { %v935_v33 = vrot.slane %v934_v18, 2  ;;  %v940_v35 = vadd.f32 %v1898_v10, %v939_v20  ;;  %v921_v36 = vmul.f32 1.442695, %v895_v21  ;;  %v896_v37 = vsub.f32 %v1864_v9, %v860_v22 }
 0x243   :  { %v948_v38 = vadd.f32 %v947_v25, %v946_v1  ;;  %v953_v15 = vrot.slane %v952_v27, 2  ;;  %v917_v39 = vmul.f32 1.442695, %v893_v28  ;;  %v894_v40 = vsub.f32 %v1867_v12, %v848_v30 }
 0x244   :  { %v1910_v19 = vpop.eup %1436  ;;  %v936_v2 = vadd.f32 %v935_v33, %v934_v18  ;;  %v941_v43 = vrot.slane %v940_v35, 2  ;;  %1444 = vpow2.f32 %v921_v36  ;;  %v923_v45 = vmul.f32 1.442695, %v896_v37 }
 0x245   :  { %v1912_v49 = vpop.eup %1438  ;;  %v949_v5 = vrot.slane %v948_v38, 1  ;;  %v954_v24 = vadd.f32 %v953_v15, %v952_v27  ;;  %v969_v51 = vrot.slane %v1910_v19, 4  ;;  %1446 = vpow2.f32 %v917_v39 }
 0x246   :  { %v1915_v32 = vpop.eup %1440  ;;  %v937_v9 = vrot.slane %v936_v2, 1  ;;  %v942_v56 = vadd.f32 %v941_v43, %v940_v35  ;;  %v957_v59 = vrot.slane %v1912_v49, 4  ;;  %1448 = vpow2.f32 %v923_v45 }
 0x247   :  { %v1918_v12 = vpop.eup %1442  ;;  %v950_v0 = vadd.f32 %v949_v5, %v948_v38  ;;  %v955_v58 = vrot.slane %v954_v24, 1  ;;  %v970_v41 = vadd.f32 %v1910_v19, %v969_v51  ;;  %v975_v60 = vrot.slane %v1915_v32, 4 }
 0x248   :  { %v938_v6 = vadd.f32 %v937_v9, %v936_v2  ;;  %v943_v7 = vrot.slane %v942_v56, 1  ;;  %v958_v1 = vadd.f32 %v1912_v49, %v957_v59  ;;  %v963_v13 = vrot.slane %v1918_v12, 4 }
 0x249   :  { %1450 = vrcp.f32 %v950_v0  ;;  %v956_v16 = vadd.f32 %v955_v58, %v954_v24  ;;  %v971_v17 = vrot.slane %v970_v41, 2  ;;  %v976_v18 = vadd.f32 %v1915_v32, %v975_v60 }
 0x24a   :  { %1452 = vrcp.f32 %v938_v6  ;;  %v944_v20 = vadd.f32 %v943_v7, %v942_v56  ;;  %v959_v21 = vrot.slane %v958_v1, 2  ;;  %v964_v22 = vadd.f32 %v1918_v12, %v963_v13 }
 0x24b   :  { %1454 = vrcp.f32 %v956_v16  ;;  %v972_v25 = vadd.f32 %v971_v17, %v970_v41  ;;  %v977_v27 = vrot.slane %v976_v18, 2  ;;  %v919_v28 = vmul.f32 1.442695, %v894_v40 }
 0x24c   :  { %1456 = vrcp.f32 %v944_v20  ;;  %v960_v30 = vadd.f32 %v959_v21, %v958_v1  ;;  %v965_v33 = vrot.slane %v964_v22, 2  ;;  %v875_v35 = vrot.slane %v1896_v62, 2 }
 0x24d   :  { %v973_v36 = vrot.slane %v972_v25, 1  ;;  %v978_v37 = vadd.f32 %v977_v27, %v976_v18  ;;  %1458 = vpow2.f32 %v919_v28  ;;  %v861_v38 = vrot.slane %v1880_v47, 4 }
 0x24e   :  { %v1928_v15 = vpop.eup %1444  ;;  %v961_v39 = vrot.slane %v960_v30, 1  ;;  %v966_v2 = vadd.f32 %v965_v33, %v964_v22  ;;  %v876_v43 = vmax.f32 %v1896_v62, %v875_v35  ;;  %v879_v45 = vrot.slane %v1882_v53, 4 }
 0x24f   :  { %v1932_v5 = vpop.eup %1446  ;;  %v974_v40 = vadd.f32 %v973_v36, %v972_v25  ;;  %v979_v24 = vrot.slane %v978_v37, 1  ;;  %v993_v51 = vrot.slane %v1928_v15, 4  ;;  %v862_v9 = vmax.f32 %v1880_v47, %v861_v38 }
 0x250   :  { %v1936_v56 = vpop.eup %1448  ;;  %v962_v59 = vadd.f32 %v961_v39, %v960_v30  ;;  %v967_v0 = vrot.slane %v966_v2, 1  ;;  %v981_v58 = vrot.slane %v1932_v5, 4  ;;  %v877_v41 = vrot.slane %v876_v43, 1 }
 0x251   :  { %1460 = vrcp.f32 %v974_v40  ;;  %v980_v60 = vadd.f32 %v979_v24, %v978_v37  ;;  %v994_v62 = vadd.f32 %v1928_v15, %v993_v51  ;;  %v999_v6 = vrot.slane %v1936_v56, 4 }
 0x252   :  { %1462 = vrcp.f32 %v962_v59  ;;  %v968_v7 = vadd.f32 %v967_v0, %v966_v2  ;;  %v982_v1 = vadd.f32 %v1932_v5, %v981_v58  ;;  %v878_v13 = vmax.f32 %v876_v43, %v877_v41 }
 0x253   :  { %v1451_v16 = vpop.eup %1450  ;;  %v995_v17 = vrot.slane %v994_v62, 2  ;;  %v1000_v18 = vadd.f32 %v1936_v56, %v999_v6  ;;  %v863_v20 = vrot.slane %v862_v9, 2  ;;  %v880_v21 = vmax.f32 %v1882_v53, %v879_v45 }
 0x254   :  { %v1453_v22 = vpop.eup %1452  ;;  %v1063_v25 = vmul.f32 %v1451_v16, %v1884_v55  ;;  %1464 = vrcp.f32 %v968_v7  ;;  %v983_v27 = vrot.slane %v982_v1, 2  ;;  %v899_v28 = vsub.f32 %v1878_v29, %v878_v13 }
 0x255   :  { %v1455_v30 = vpop.eup %1454  ;;  %v1061_v33 = vmul.f32 %v1453_v22, %v1889_v63  ;;  %v996_v35 = vadd.f32 %v995_v17, %v994_v62  ;;  %v1001_v36 = vrot.slane %v1000_v18, 2  ;;  %v864_v37 = vmax.f32 %v862_v9, %v863_v20 }
 0x256   :  { %v1457_v38 = vpop.eup %1456  ;;  %v1064_v39 = vmul.f32 %v1455_v30, %v1892_v4  ;;  %v984_v2 = vadd.f32 %v983_v27, %v982_v1  ;;  %v929_v43 = vmul.f32 1.442695, %v899_v28  ;;  %v881_v40 = vrot.slane %v880_v21, 2 }
 0x257   :  { %v1948_v45 = vpop.eup %1458  ;;  %v1077_v55 = vmul.f32 %v1061_v33, %v1787_v50  ;;  %v1062_v24 = vmul.f32 %v1457_v38, %v1898_v10  ;;  %v997_v51 = vrot.slane %v996_v35, 1  ;;  %v1002_v29 = vadd.f32 %v1001_v36, %v1000_v18 }
 0x258   :  { %v985_v59 = vrot.slane %v984_v2, 1  ;;  %v987_v63 = vrot.slane %v1948_v45, 4  ;;  %1466 = vpow2.f32 %v929_v43  ;;  %v865_v0 = vrot.slane %v864_v37, 1 }
 0x259   :  { %v1093_v9 = vrot.slane %v1077_v55, 4  ;;  %v1078_v58 = vmul.f32 %v1062_v24, %v1796_v57  ;;  %v998_v4 = vadd.f32 %v997_v51, %v996_v35  ;;  %v1003_v41 = vrot.slane %v1002_v29, 1 }
 0x25a   :  { %v986_v62 = vadd.f32 %v985_v59, %v984_v2  ;;  %v988_v6 = vadd.f32 %v1948_v45, %v987_v63  ;;  %v866_v7 = vmax.f32 %v864_v37, %v865_v0  ;;  %v882_v1 = vmax.f32 %v880_v21, %v881_v40 }
 0x25b   :  { %v1461_v50 = vpop.eup %1460  ;;  %v1099_v13 = vrot.slane %v1078_v58, 4  ;;  %1468 = vrcp.f32 %v998_v4  ;;  %v1004_v10 = vadd.f32 %v1003_v41, %v1002_v29  ;;  %v867_v16 = vrot.slane %v1887_v61, 4 }
 0x25c   :  { %v1463_v17 = vpop.eup %1462  ;;  %1470 = vrcp.f32 %v986_v62  ;;  %v989_v18 = vrot.slane %v988_v6, 2  ;;  %v897_v20 = vsub.f32 %v1880_v47, %v866_v7  ;;  %v883_v22 = vrot.slane %v882_v1, 1 }
 0x25d   :  { %1472 = vrcp.f32 %v1004_v10  ;;  %v868_v57 = vmax.f32 %v1887_v61, %v867_v16  ;;  %v1065_v27 = vmul.f32 %v1463_v17, %v1912_v49  ;;  %v1067_v28 = vmul.f32 %v1461_v50, %v1910_v19 }
 0x25e   :  { %v1465_v21 = vpop.eup %1464  ;;  %v990_v30 = vadd.f32 %v989_v18, %v988_v6  ;;  %v925_v33 = vmul.f32 1.442695, %v897_v20  ;;  %v884_v35 = vmax.f32 %v882_v1, %v883_v22  ;;  %1474 = vrcp.f32 %v980_v60 }
 0x25f   :  { %v869_v36 = vrot.slane %v868_v57, 2  ;;  %v1066_v37 = vmul.f32 %v1465_v21, %v1918_v12  ;;  %v1079_v38 = vmul.f32 %v1782_v46, %v1063_v25  ;;  %v1080_v47 = vmul.f32 %v1792_v54, %v1064_v39 }
 0x260   :  { %v991_v2 = vrot.slane %v990_v30, 1  ;;  %1476 = vpow2.f32 %v925_v33  ;;  %v900_v43 = vsub.f32 %v1882_v53, %v884_v35  ;;  %v1081_v49 = vmul.f32 %v1065_v27, %v1807_v8 }
 0x261   :  { %v870_v40 = vmax.f32 %v868_v57, %v869_v36  ;;  %v1966_v19 = vmul.f32 %v1066_v37, %v1815_v14  ;;  %v1969_v24 = vmul.f32 %v1801_v3, %v1067_v28  ;;  %v1094_v60 = vadd.f32 %v1093_v9, %v1077_v55 }
 0x262   :  { %v1971_v51 = vpop.eup %1466  ;;  %v992_v12 = vadd.f32 %v991_v2, %v990_v30  ;;  %v931_v46 = vmul.f32 1.442695, %v900_v43  ;;  %v1100_v25 = vadd.f32 %v1099_v13, %v1078_v58  ;;  %v1105_v54 = vrot.slane %v1079_v38, 4 }
 0x263   :  { %v1017_v39 = vrot.slane %v1971_v51, 4  ;;  %v871_v29 = vrot.slane %v870_v40, 1  ;;  %v1095_v53 = vrot.slane %v1094_v60, 2  ;;  %v1111_v63 = vrot.slane %v1080_v47, 4 }
 0x264   :  { %1478 = vrcp.f32 %v992_v12  ;;  %v1101_v8 = vrot.slane %v1100_v25, 2  ;;  %v1106_v59 = vadd.f32 %v1105_v54, %v1079_v38  ;;  %v1117_v62 = vrot.slane %v1081_v49, 4 }
 0x265   :  { %v1469_v14 = vpop.eup %1468  ;;  %v1018_v0 = vadd.f32 %v1971_v51, %v1017_v39  ;;  %1480 = vpow2.f32 %v931_v46  ;;  %v872_v3 = vmax.f32 %v870_v40, %v871_v29  ;;  %v1096_v55 = vadd.f32 %v1095_v53, %v1094_v60 }
 0x266   :  { %v1471_v9 = vpop.eup %1470  ;;  %v1071_v4 = vmul.f32 %v1469_v14, %v1928_v15  ;;  %v1102_v41 = vadd.f32 %v1101_v8, %v1100_v25  ;;  %v1107_v58 = vrot.slane %v1106_v59, 2  ;;  %v1112_v20 = vadd.f32 %v1111_v63, %v1080_v47 }
 0x267   :  { %v1473_v6 = vpop.eup %1472  ;;  %v1069_v7 = vmul.f32 %v1471_v9, %v1932_v5  ;;  %v1019_v1 = vrot.slane %v1018_v0, 2  ;;  %v898_v50 = vsub.f32 %v1887_v61, %v872_v3  ;;  %v1097_v13 = vrot.slane %v1096_v55, 1 }
 0x268   :  { %v1475_v10 = vpop.eup %1474  ;;  %v1072_v16 = vmul.f32 %v1473_v6, %v1936_v56  ;;  %v1980_v17 = vmul.f32 %v1820_v23, %v1071_v4  ;;  %v1103_v18 = vrot.slane %v1102_v41, 1  ;;  %v1108_v21 = vadd.f32 %v1107_v58, %v1106_v59 }
 0x269   :  { %v1085_v15 = vmul.f32 %v1069_v7, %v1824_v26  ;;  %v1020_v22 = vadd.f32 %v1019_v1, %v1018_v0  ;;  %v927_v57 = vmul.f32 1.442695, %v898_v50  ;;  %v1068_v27 = vmul.f32 %v1475_v10, %v1915_v32 }
 0x26a   :  { %v1984_v28 = vpop.eup %1476  ;;  %v1987_v5 = vmul.f32 %v1829_v31, %v1072_v16  ;;  %v1989_v61 = vadd.f32 %v1097_v13, %v1096_v55  ;;  %v1992_v30 = vadd.f32 %v1103_v18, %v1102_v41  ;;  %v1113_v35 = vrot.slane %v1112_v20, 2 }
 0x26b   :  { %v1021_v56 = vrot.slane %v1020_v22, 1  ;;  %v1005_v23 = vrot.slane %v1984_v28, 4  ;;  %1482 = vpow2.f32 %v927_v57  ;;  %v1141_v33 = vrot.slane %v1085_v15, 4 }
 0x26c   :  { %v1084_v26 = vmul.f32 %v1811_v11, %v1068_v27  ;;  %v1118_v36 = vadd.f32 %v1117_v62, %v1081_v49  ;;  %v1123_v31 = vrot.slane %v1966_v19, 4  ;;  %v1129_v38 = vrot.slane %v1969_v24, 4 }
 0x26d   :  { %v1022_v32 = vadd.f32 %v1021_v56, %v1020_v22  ;;  %v1006_v37 = vadd.f32 %v1984_v28, %v1005_v23  ;;  %v1109_v2 = vrot.slane %v1108_v21, 1  ;;  %v1114_v43 = vadd.f32 %v1113_v35, %v1112_v20 }
 0x26e   :  { %v1479_v47 = vpop.eup %1478  ;;  %v1119_v40 = vrot.slane %v1118_v36, 2  ;;  %v1135_v60 = vrot.slane %v1084_v26, 4  ;;  %v1124_v49 = vadd.f32 %v1123_v31, %v1966_v19  ;;  %v1130_v39 = vadd.f32 %v1129_v38, %v1969_v24 }
 0x26f   :  { %v1998_v12 = vpop.eup %1480  ;;  %v1070_v46 = vmul.f32 %v1479_v47, %v1948_v45  ;;  %1484 = vrcp.f32 %v1022_v32  ;;  %v1007_v11 = vrot.slane %v1006_v37, 2  ;;  %v1142_v29 = vadd.f32 %v1141_v33, %v1085_v15 }
 0x270   :  { %v1023_v25 = vrot.slane %v1998_v12, 4  ;;  %v1120_v54 = vadd.f32 %v1119_v40, %v1118_v36  ;;  %v1125_v59 = vrot.slane %v1124_v49, 2  ;;  %v1136_v63 = vadd.f32 %v1135_v60, %v1084_v26 }
 0x271   :  { %v1086_v53 = vmul.f32 %v1070_v46, %v1833_v34  ;;  %v1008_v8 = vadd.f32 %v1007_v11, %v1006_v37  ;;  %v1115_v45 = vrot.slane %v1114_v43, 1  ;;  %v1131_v3 = vrot.slane %v1130_v39, 2 }
 0x272   :  { %v1024_v14 = vadd.f32 %v1998_v12, %v1023_v25  ;;  %v1121_v0 = vrot.slane %v1120_v54, 1  ;;  %v1126_v9 = vadd.f32 %v1125_v59, %v1124_v49  ;;  %v1137_v4 = vrot.slane %v1136_v63, 2 }
 0x273   :  { %v1147_v19 = vrot.slane %v1086_v53, 4  ;;  %v1009_v55 = vrot.slane %v1008_v8, 1  ;;  %v1110_v41 = vadd.f32 %v1109_v2, %v1108_v21  ;;  %v1132_v58 = vadd.f32 %v1131_v3, %v1130_v39 }
 0x274   :  { %v1025_v24 = vrot.slane %v1024_v14, 2  ;;  %v1143_v62 = vrot.slane %v1142_v29, 2  ;;  %v1127_v7 = vrot.slane %v1126_v9, 1  ;;  %v1138_v1 = vadd.f32 %v1137_v4, %v1136_v63 }
 0x275   :  { %v2006_v34 = vpop.eup %1482  ;;  %v1010_v6 = vadd.f32 %v1009_v55, %v1008_v8  ;;  %v1148_v50 = vadd.f32 %v1147_v19, %v1086_v53  ;;  %v1116_v16 = vadd.f32 %v1115_v45, %v1114_v43  ;;  %v1122_v20 = vadd.f32 %v1121_v0, %v1120_v54 }
 0x276   :  { %v1026_v13 = vadd.f32 %v1025_v24, %v1024_v14  ;;  %v1011_v10 = vrot.slane %v2006_v34, 4  ;;  %v1144_v18 = vadd.f32 %v1143_v62, %v1142_v29  ;;  %v1133_v15 = vrot.slane %v1132_v58, 1 }
 0x277   :  { %1486 = vrcp.f32 %v1010_v6  ;;  %v1149_v22 = vrot.slane %v1148_v50, 2  ;;  %v1128_v21 = vadd.f32 %v1127_v7, %v1126_v9  ;;  %v1139_v33 = vrot.slane %v1138_v1, 1 }
 0x278   :  { %v1027_v57 = vrot.slane %v1026_v13, 1  ;;  %v1012_v27 = vadd.f32 %v2006_v34, %v1011_v10  ;;  %v1145_v56 = vrot.slane %v1144_v18, 1  ;;  %v1153_v35 = vrot.slane %v1980_v17, 4 }
 0x279   :  { %v1485_v23 = vpop.eup %1484  ;;  %v1150_v26 = vadd.f32 %v1149_v22, %v1148_v50  ;;  %v1159_v36 = vrot.slane %v1987_v5, 4  ;;  %v1206_v40 = vsel %vm1205_vm3, %v1992_v30, %v1989_v61  ;;  %v1134_v29 = vadd.f32 %v1133_v15, %v1132_v58 }
 0x27a   :  { %v1028_v32 = vadd.f32 %v1027_v57, %v1026_v13  ;;  %v1013_v37 = vrot.slane %v1012_v27, 2  ;;  %v1075_v31 = vmul.f32 %v1485_v23, %v1971_v51  ;;  %v1146_v38 = vadd.f32 %v1145_v56, %v1144_v18 }
 0x27b   :  { %v1151_v47 = vrot.slane %v1150_v26, 1  ;;  %v1154_v2 = vadd.f32 %v1153_v35, %v1980_v17  ;;  %v1160_v43 = vadd.f32 %v1159_v36, %v1987_v5  ;;  %v1208_v11 = vsel %vm1207_vm4, %v1110_v41, %v1206_v40 }
 0x27c   :  { %v1014_v60 = vadd.f32 %v1013_v37, %v1012_v27  ;;  %1488 = vrcp.f32 %v1028_v32  ;;  %v1091_v46 = vmul.f32 %v1837_v42, %v1075_v31  ;;  %v1210_v51 = vsel %vm1209_vm5, %v1116_v16, %v1208_v11 }
 0x27d   :  { %v1152_v49 = vadd.f32 %v1151_v47, %v1150_v26  ;;  %v1155_v25 = vrot.slane %v1154_v2, 2  ;;  %v1161_v54 = vrot.slane %v1160_v43, 2  ;;  %v1140_v17 = vadd.f32 %v1139_v33, %v1138_v1 }
 0x27e   :  { %v1015_v39 = vrot.slane %v1014_v60, 1  ;;  %v1212_v5 = vsel %vm1211_vm6, %v1122_v20, %v1210_v51  ;;  %v1177_v7 = vrot.slane %v1091_v46, 4 }
 0x27f   :  { %v1156_v53 = vadd.f32 %v1155_v25, %v1154_v2  ;;  %v1162_v8 = vadd.f32 %v1161_v54, %v1160_v43  ;;  %v1214_v61 = vsel %vm1213_vm7, %v1128_v21, %v1212_v5  ;;  %v1219_v30 = vsel %vm1205_vm3, %v1152_v49, %v1146_v38 }
 0x280   :  { %v1016_v59 = vadd.f32 %v1015_v39, %v1014_v60  ;;  %v1216_v42 = vsel %vm1215_vm8, %v1134_v29, %v1214_v61  ;;  %v1178_v16 = vadd.f32 %v1177_v7, %v1091_v46 }
 0x281   :  { %v1487_v63 = vpop.eup %1486  ;;  %v1157_v14 = vrot.slane %v1156_v53, 1  ;;  %v1163_v45 = vrot.slane %v1162_v8, 1  ;;  %v1218_v0 = vsel %vm1217_vm9, %v1140_v17, %v1216_v42 }
 0x282   :  { %1490 = vrcp.f32 %v1016_v59  ;;  %v1073_v3 = vmul.f32 %v1487_v63, %v1984_v28  ;;  %1228 = vst [vmem:[#allocation11] sm:$0xff] %v1218_v0  ;;  %v1179_v57 = vrot.slane %v1178_v16, 2 }
 0x283   :  { %v1158_v19 = vadd.f32 %v1157_v14, %v1156_v53  ;;  %v1164_v9 = vadd.f32 %v1163_v45, %v1162_v8 }
 0x284   :  { %v1089_v55 = vmul.f32 %v1073_v3, %v1841_v44  ;;  %v1180_v23 = vadd.f32 %v1179_v57, %v1178_v16 }
 0x285   :  { %v1220_v4 = vsel %vm1207_vm4, %v1158_v19, %v1219_v30 }
 0x286   :  { %v1489_v24 = vpop.eup %1488  ;;  %v1165_v41 = vrot.slane %v1089_v55, 4  ;;  %v1221_v58 = vsel %vm1209_vm5, %v1164_v9, %v1220_v4  ;;  %v1181_v35 = vrot.slane %v1180_v23, 1 }
 0x287   :  { %v1076_v62 = vmul.f32 %v1489_v24, %v1998_v12 }
 0x288   :  { %v1166_v6 = vadd.f32 %v1165_v41, %v1089_v55  ;;  %v1182_v37 = vadd.f32 %v1181_v35, %v1180_v23 }
 0x289   :  { %v1092_v1 = vmul.f32 %v1845_v48, %v1076_v62 }
 0x28a   :  { %v1167_v50 = vrot.slane %v1166_v6, 2 }
 0x28b   :  { %v1183_v13 = vrot.slane %v1092_v1, 4 }
 0x28c   :  { %v1491_v28 = vpop.eup %1490  ;;  %v1168_v10 = vadd.f32 %v1167_v50, %v1166_v6 }
 0x28d   :  { %v1074_v44 = vmul.f32 %v1491_v28, %v2006_v34  ;;  %v1184_v18 = vadd.f32 %v1183_v13, %v1092_v1 }
 0x28e   :  { %v1169_v20 = vrot.slane %v1168_v10, 1 }
 0x28f   :  { %v1090_v15 = vmul.f32 %v1074_v44, %v1849_v52  ;;  %v1185_v21 = vrot.slane %v1184_v18, 2 }
 0x290   :  { %v1170_v22 = vadd.f32 %v1169_v20, %v1168_v10 }
 0x291   :  { %v1171_v27 = vrot.slane %v1090_v15, 4  ;;  %v1186_v33 = vadd.f32 %v1185_v21, %v1184_v18 }
 0x292   :  { %v1222_v12 = vsel %vm1211_vm6, %v1170_v22, %v1221_v58 }
 0x293   :  { %v1172_v56 = vadd.f32 %v1171_v27, %v1090_v15  ;;  %v1187_v32 = vrot.slane %v1186_v33, 1 }
 0x295   :  { %v1173_v48 = vrot.slane %v1172_v56, 2  ;;  %v1188_v31 = vadd.f32 %v1187_v32, %v1186_v33 }
 0x297   :  { %v1174_v26 = vadd.f32 %v1173_v48, %v1172_v56 }
 0x299   :  { %v1175_v36 = vrot.slane %v1174_v26, 1 }
 0x29b   :  { %v1176_v34 = vadd.f32 %v1175_v36, %v1174_v26 }
 0x29d   :  { %v1223_v52 = vsel %vm1213_vm7, %v1176_v34, %v1222_v12 }
 0x29e   :  { %v1224_v38 = vsel %vm1215_vm8, %v1182_v37, %v1223_v52 }
 0x29f   :  { %v1225_v47 = vsel %vm1217_vm9, %v1188_v31, %v1224_v38 }
 0x2a0   :  { %1229 = vst [vmem:[#allocation11 + $0x8] sm:$0xff] %v1225_v47 }
 0x2a1   :  { %1613 = shalt.err (!%p1610_p2)
}
 0x2a2   :  { %s1614_s3 = scalar_lea.hbm %s2055_s5, 256 }
 0x2a3   :  { %p1615_p3 = scmp.ne.s32.totalorder %s2055_s5, %s1614_s3  ;;  %p1618_p4 = scmp.lt.u32.totalorder %s1614_s3, %s2055_s5 }
 0x2a5   :  { %p1620_p5 = pnand %p1618_p4, %p1615_p3 }
 0x2a7   :  { %1623 = shalt.err (!%p1620_p5)
}
 0x2a8   :  { %s1643_s10 = smov 128   ;;  %s1644_s11 = smov 8  }
 0x2a9   :  { %1241 = dma.vmem_to_hbm [thread:$0]  %s1236_s30, 256, %s2055_s5, [#allocation4], %s1643_s10, %s1643_s10, %s1644_s11  }
 0x2aa   :  { %1630 = dma.done.wait [#allocation4], 256  }
 0x2ab   :  { %1631 = vsyncadd [#allocation4], 4294967040 }
 0x2ac   :  { %1245 = vsyncpa [#allocation3], 1 }
 0x2ad   :  { %1246 = vsyncpa [#allocation6], 1 }
 0x2ae   :  { %1247 = vsyncpa [#allocation9], 1 }
 0x2af   :  { %1248 = vsyncpa [#allocation4], 1 }

</bundles_post_ra>
